<compile_context>
chip_gen: v7x
topology: tpu7x:2x2x1
jax: 0.10.0
libtpu: 0.0.40
codegen_flags: <defaults>
</compile_context>

<pallas_src>
import jax
import jax.numpy as jnp
from jax.experimental import pallas as pl
from jax.experimental.pallas import tpu as pltpu

_TARGET_TILE_B = 1024   # target rows per grid step (512-2048 sweet spot)


def _actor_kernel(x_ref, scale_ref,
                  w1_ref, b1_ref,
                  w2_ref, b2_ref,
                  w3_ref, b3_ref,
                  w4_ref, b4_ref,
                  w5_ref, b5_ref,
                  out_ref):
    x = x_ref[...]

    h = jnp.dot(x, w1_ref[...], preferred_element_type=jnp.float32) + b1_ref[...]
    h = jnp.maximum(h, 0.0)

    h = jnp.dot(h, w2_ref[...], preferred_element_type=jnp.float32) + b2_ref[...]
    h = jnp.maximum(h, 0.0)

    h = jnp.dot(h, w3_ref[...], preferred_element_type=jnp.float32) + b3_ref[...]
    h = jnp.maximum(h, 0.0)

    h = jnp.dot(h, w4_ref[...], preferred_element_type=jnp.float32) + b4_ref[...]
    h = jnp.maximum(h, 0.0)

    a = jnp.dot(h, w5_ref[...], preferred_element_type=jnp.float32) + b5_ref[...]
    out_ref[...] = jnp.round(jnp.tanh(a) * scale_ref[0, 0])


def _round_up(x, m):
    return ((x + m - 1) // m) * m


def _choose_tiling(B):
    """Pick (grid_b, tile_b): grid first, then tile = round_up(cdiv(B, grid), 8).

    Minimizes zero-row padding (M only needs sublane-8 alignment) while keeping
    >=2 grid steps for moderately large B so v7x's two TensorCores both get work.
    """
    if B <= 8:
        return 1, 8
    grid_b = max(1, -(-B // _TARGET_TILE_B))
    if grid_b == 1 and B > 256:
        grid_b = 2
    tile_b = _round_up(-(-B // grid_b), 8)
    return grid_b, tile_b


def actor_forward(state, params, max_action):
    """state: (B, state_dim) f32; params: dict of (in,out) weights + (out,) biases."""
    B, state_dim = state.shape
    action_dim = params["w5"].shape[1]

    # ---- batch tiling: minimal zero-row padding, sublane(8)-aligned tiles ----
    grid_b, tile_b = _choose_tiling(B)
    b_pad = grid_b * tile_b
    if b_pad != B:
        state = jnp.pad(state, ((0, b_pad - B), (0, 0)))

    # max_action as an SMEM scalar -> no recompile per distinct value.
    scale = jnp.full((1, 1), max_action, jnp.float32)

    weights = []
    w_specs = []
    for i in range(1, 6):
        w = params[f"w{i}"]
        b = params[f"b{i}"].reshape(1, -1)
        weights += [w, b]
        # Full-array blocks, constant index_map -> stay VMEM-resident across grid.
        w_specs += [pl.BlockSpec(w.shape, lambda i_: (0, 0)),
                    pl.BlockSpec(b.shape, lambda i_: (0, 0))]

    in_specs = [
        pl.BlockSpec((tile_b, state_dim), lambda i: (i, 0)),
        pl.BlockSpec((1, 1), lambda i: (0, 0),
                     memory_space=pltpu.MemorySpace.SMEM),
    ] + w_specs
    # True-width output block (last dim == full array dim -> legal), no padded
    # 128-column slab and no post-kernel column slice.
    out_specs = pl.BlockSpec((tile_b, action_dim), lambda i: (i, 0))

    dims = [state_dim, 64, 128, 64, 32, action_dim]
    flops = 2 * b_pad * sum(a * b for a, b in zip(dims[:-1], dims[1:]))
    bytes_accessed = 4 * (b_pad * state_dim + b_pad * action_dim +
                          sum(a * b + b for a, b in zip(dims[:-1], dims[1:])))

    out = pl.pallas_call(
        _actor_kernel,
        out_shape=jax.ShapeDtypeStruct((b_pad, action_dim), jnp.float32),
        grid=(grid_b,),
        in_specs=in_specs,
        out_specs=out_specs,
        compiler_params=pltpu.CompilerParams(
            dimension_semantics=("parallel",),
            vmem_limit_bytes=32 * 1024 * 1024,
        ),
        cost_estimate=pl.CostEstimate(
            flops=flops,
            transcendentals=b_pad * action_dim,
            bytes_accessed=bytes_accessed,
        ),
    )(state, scale, *weights)

    # Only the (cheap, row-wise) ragged-batch slice remains; no column slice.
    return out if b_pad == B else out[:B]


def init_actor_params(key, state_dim, action_dim):
    """Deterministic init mirroring nn.Linear's U(-1/sqrt(fan_in), 1/sqrt(fan_in)).
    Weights are stored as (in, out) (transposed vs. torch's (out, in))."""
    dims = [state_dim, 64, 128, 64, 32, action_dim]
    params = {}
    for i, (fin, fout) in enumerate(zip(dims[:-1], dims[1:]), start=1):
        key, kw, kb = jax.random.split(key, 3)
        bound = 1.0 / jnp.sqrt(jnp.float32(fin))
        params[f"w{i}"] = jax.random.uniform(
            kw, (fin, fout), jnp.float32, minval=-bound, maxval=bound)
        params[f"b{i}"] = jax.random.uniform(
            kb, (fout,), jnp.float32, minval=-bound, maxval=bound)
    return params


def actor_forward_ref(state, params, max_action):
    """Pure-JAX reference for correctness checking."""
    h = state
    for i in range(1, 5):
        h = jnp.maximum(h @ params[f"w{i}"] + params[f"b{i}"], 0.0)
    a = jnp.tanh(h @ params["w5"] + params["b5"]) * max_action
    return jnp.round(a)


if __name__ == "__main__":
    key = jax.random.PRNGKey(0)
    key, kx = jax.random.split(key)

    batch = 8
    state_dim = 16
    action_dim = 4
    max_action = 2.0

    params = init_actor_params(key, state_dim, action_dim)
    state = jax.random.normal(kx, (batch, state_dim), jnp.float32)

    out = actor_forward(state, params, max_action)
    out = jax.block_until_ready(out)

    ref = actor_forward_ref(state, params, max_action)
    assert out.shape == (batch, action_dim), out.shape
    assert jnp.allclose(out, ref, atol=1e-5), (out, ref)

    # Also exercise the multi-tile / ragged-batch path (grid_b=2, tile_b=152).
    key, kx2 = jax.random.split(key)
    big_state = jax.random.normal(kx2, (300, state_dim), jnp.float32)
    big_out = jax.block_until_ready(actor_forward(big_state, params, max_action))
    big_ref = actor_forward_ref(big_state, params, max_action)
    assert big_out.shape == (300, action_dim)
    assert jnp.allclose(big_out, big_ref, atol=1e-5)

    print("KERNEL_OK")
</pallas_src>

<mosaic_0001>
module attributes {stable_mosaic.version = 11 : i64} {
  func.func @_actor_kernel(%arg0: i32, %arg1: memref<8x16xf32, #tpu.memory_space<vmem>>, %arg2: memref<1x1xf32, #tpu.memory_space<smem>>, %arg3: memref<16x64xf32, #tpu.memory_space<vmem>>, %arg4: memref<1x64xf32, #tpu.memory_space<vmem>>, %arg5: memref<64x128xf32, #tpu.memory_space<vmem>>, %arg6: memref<1x128xf32, #tpu.memory_space<vmem>>, %arg7: memref<128x64xf32, #tpu.memory_space<vmem>>, %arg8: memref<1x64xf32, #tpu.memory_space<vmem>>, %arg9: memref<64x32xf32, #tpu.memory_space<vmem>>, %arg10: memref<1x32xf32, #tpu.memory_space<vmem>>, %arg11: memref<32x4xf32, #tpu.memory_space<vmem>>, %arg12: memref<1x4xf32, #tpu.memory_space<vmem>>, %arg13: memref<8x4xf32, #tpu.memory_space<vmem>>) attributes {dimension_semantics = [#tpu.dimension_semantics<parallel>], iteration_bounds = array<i64: 1>, scalar_prefetch = 0 : i64, scratch_operands = 0 : i64, tpu.core_type = #tpu.core_type<tc>, window_params = [{transform_indices = @transform_0, window_bounds = array<i64: 8, 16>}, {transform_indices = @transform_1, window_bounds = array<i64: 1, 1>}, {pipeline_mode = #tpu.pipeline_mode<synchronous>, transform_indices = @transform_2, window_bounds = array<i64: 16, 64>}, {pipeline_mode = #tpu.pipeline_mode<synchronous>, transform_indices = @transform_3, window_bounds = array<i64: 1, 64>}, {pipeline_mode = #tpu.pipeline_mode<synchronous>, transform_indices = @transform_4, window_bounds = array<i64: 64, 128>}, {pipeline_mode = #tpu.pipeline_mode<synchronous>, transform_indices = @transform_5, window_bounds = array<i64: 1, 128>}, {pipeline_mode = #tpu.pipeline_mode<synchronous>, transform_indices = @transform_6, window_bounds = array<i64: 128, 64>}, {pipeline_mode = #tpu.pipeline_mode<synchronous>, transform_indices = @transform_7, window_bounds = array<i64: 1, 64>}, {pipeline_mode = #tpu.pipeline_mode<synchronous>, transform_indices = @transform_8, window_bounds = array<i64: 64, 32>}, {pipeline_mode = #tpu.pipeline_mode<synchronous>, transform_indices = @transform_9, window_bounds = array<i64: 1, 32>}, {pipeline_mode = #tpu.pipeline_mode<synchronous>, transform_indices = @transform_10, window_bounds = array<i64: 32, 4>}, {pipeline_mode = #tpu.pipeline_mode<synchronous>, transform_indices = @transform_11, window_bounds = array<i64: 1, 4>}, {transform_indices = @transform_12, window_bounds = array<i64: 8, 4>}]} {
    %c0 = arith.constant 0 : index
    %c0_0 = arith.constant 0 : index
    %0 = vector.load %arg1[%c0, %c0_0] : memref<8x16xf32, #tpu.memory_space<vmem>>, vector<8x16xf32>
    %c0_1 = arith.constant 0 : index
    %c0_2 = arith.constant 0 : index
    %1 = vector.load %arg3[%c0_1, %c0_2] : memref<16x64xf32, #tpu.memory_space<vmem>>, vector<16x64xf32>
    %cst = arith.constant dense<0.000000e+00> : vector<8x64xf32>
    %2 = tpu.matmul %0, %1, %cst {dimension_numbers = #tpu.dot_dimension_numbers<[1], [0], [0], [1], [0, 0, 1, 1], [], []>} : vector<8x16xf32>, vector<16x64xf32>, vector<8x64xf32> -> vector<8x64xf32>
    %c0_3 = arith.constant 0 : index
    %c0_4 = arith.constant 0 : index
    %3 = vector.load %arg4[%c0_3, %c0_4] : memref<1x64xf32, #tpu.memory_space<vmem>>, vector<1x64xf32>
    %4 = vector.broadcast %3 : vector<1x64xf32> to vector<8x64xf32>
    %5 = arith.addf %2, %4 : vector<8x64xf32>
    %cst_5 = arith.constant 0.000000e+00 : f32
    %6 = vector.broadcast %cst_5 : f32 to vector<8x64xf32>
    %7 = arith.maximumf %5, %6 : vector<8x64xf32>
    %c0_6 = arith.constant 0 : index
    %c0_7 = arith.constant 0 : index
    %8 = vector.load %arg5[%c0_6, %c0_7] : memref<64x128xf32, #tpu.memory_space<vmem>>, vector<64x128xf32>
    %cst_8 = arith.constant dense<0.000000e+00> : vector<8x128xf32>
    %9 = tpu.matmul %7, %8, %cst_8 {dimension_numbers = #tpu.dot_dimension_numbers<[1], [0], [0], [1], [0, 0, 1, 1], [], []>} : vector<8x64xf32>, vector<64x128xf32>, vector<8x128xf32> -> vector<8x128xf32>
    %c0_9 = arith.constant 0 : index
    %c0_10 = arith.constant 0 : index
    %10 = vector.load %arg6[%c0_9, %c0_10] : memref<1x128xf32, #tpu.memory_space<vmem>>, vector<1x128xf32>
    %11 = vector.broadcast %10 : vector<1x128xf32> to vector<8x128xf32>
    %12 = arith.addf %9, %11 : vector<8x128xf32>
    %cst_11 = arith.constant 0.000000e+00 : f32
    %13 = vector.broadcast %cst_11 : f32 to vector<8x128xf32>
    %14 = arith.maximumf %12, %13 : vector<8x128xf32>
    %c0_12 = arith.constant 0 : index
    %c0_13 = arith.constant 0 : index
    %15 = vector.load %arg7[%c0_12, %c0_13] : memref<128x64xf32, #tpu.memory_space<vmem>>, vector<128x64xf32>
    %cst_14 = arith.constant dense<0.000000e+00> : vector<8x64xf32>
    %16 = tpu.matmul %14, %15, %cst_14 {dimension_numbers = #tpu.dot_dimension_numbers<[1], [0], [0], [1], [0, 0, 1, 1], [], []>} : vector<8x128xf32>, vector<128x64xf32>, vector<8x64xf32> -> vector<8x64xf32>
    %c0_15 = arith.constant 0 : index
    %c0_16 = arith.constant 0 : index
    %17 = vector.load %arg8[%c0_15, %c0_16] : memref<1x64xf32, #tpu.memory_space<vmem>>, vector<1x64xf32>
    %18 = vector.broadcast %17 : vector<1x64xf32> to vector<8x64xf32>
    %19 = arith.addf %16, %18 : vector<8x64xf32>
    %cst_17 = arith.constant 0.000000e+00 : f32
    %20 = vector.broadcast %cst_17 : f32 to vector<8x64xf32>
    %21 = arith.maximumf %19, %20 : vector<8x64xf32>
    %c0_18 = arith.constant 0 : index
    %c0_19 = arith.constant 0 : index
    %22 = vector.load %arg9[%c0_18, %c0_19] : memref<64x32xf32, #tpu.memory_space<vmem>>, vector<64x32xf32>
    %cst_20 = arith.constant dense<0.000000e+00> : vector<8x32xf32>
    %23 = tpu.matmul %21, %22, %cst_20 {dimension_numbers = #tpu.dot_dimension_numbers<[1], [0], [0], [1], [0, 0, 1, 1], [], []>} : vector<8x64xf32>, vector<64x32xf32>, vector<8x32xf32> -> vector<8x32xf32>
    %c0_21 = arith.constant 0 : index
    %c0_22 = arith.constant 0 : index
    %24 = vector.load %arg10[%c0_21, %c0_22] : memref<1x32xf32, #tpu.memory_space<vmem>>, vector<1x32xf32>
    %25 = vector.broadcast %24 : vector<1x32xf32> to vector<8x32xf32>
    %26 = arith.addf %23, %25 : vector<8x32xf32>
    %cst_23 = arith.constant 0.000000e+00 : f32
    %27 = vector.broadcast %cst_23 : f32 to vector<8x32xf32>
    %28 = arith.maximumf %26, %27 : vector<8x32xf32>
    %c0_24 = arith.constant 0 : index
    %c0_25 = arith.constant 0 : index
    %29 = vector.load %arg11[%c0_24, %c0_25] : memref<32x4xf32, #tpu.memory_space<vmem>>, vector<32x4xf32>
    %cst_26 = arith.constant dense<0.000000e+00> : vector<8x4xf32>
    %30 = tpu.matmul %28, %29, %cst_26 {dimension_numbers = #tpu.dot_dimension_numbers<[1], [0], [0], [1], [0, 0, 1, 1], [], []>} : vector<8x32xf32>, vector<32x4xf32>, vector<8x4xf32> -> vector<8x4xf32>
    %c0_27 = arith.constant 0 : index
    %c0_28 = arith.constant 0 : index
    %31 = vector.load %arg12[%c0_27, %c0_28] : memref<1x4xf32, #tpu.memory_space<vmem>>, vector<1x4xf32>
    %32 = vector.broadcast %31 : vector<1x4xf32> to vector<8x4xf32>
    %33 = arith.addf %30, %32 : vector<8x4xf32>
    %34 = math.tanh %33 : vector<8x4xf32>
    %c0_29 = arith.constant 0 : index
    %c0_30 = arith.constant 0 : index
    %35 = memref.load %arg2[%c0_29, %c0_30] : memref<1x1xf32, #tpu.memory_space<smem>>
    %36 = vector.broadcast %35 : f32 to vector<8x4xf32>
    %37 = arith.mulf %34, %36 : vector<8x4xf32>
    %38 = math.roundeven %37 : vector<8x4xf32>
    %c0_31 = arith.constant 0 : index
    %c0_32 = arith.constant 0 : index
    %39 = vector.load %arg13[%c0_31, %c0_32] : memref<8x4xf32, #tpu.memory_space<vmem>>, vector<8x4xf32>
    tpu.vector_store %arg13[%c0_31, %c0_32], %38 {strides = array<i32>} : memref<8x4xf32, #tpu.memory_space<vmem>>, vector<8x4xf32>,
    return
  }
  func.func @transform_0(%arg0: i32) -> (i32, i32) {
    %c0_i32 = arith.constant 0 : i32
    %c0_i32_0 = arith.constant 0 : i32
    return %arg0, %c0_i32 : i32, i32
  }
  func.func @transform_1(%arg0: i32) -> (i32, i32) {
    %c0_i32 = arith.constant 0 : i32
    %c0_i32_0 = arith.constant 0 : i32
    %c0_i32_1 = arith.constant 0 : i32
    return %c0_i32, %c0_i32_0 : i32, i32
  }
  func.func @transform_2(%arg0: i32) -> (i32, i32) {
    %c0_i32 = arith.constant 0 : i32
    %c0_i32_0 = arith.constant 0 : i32
    %c0_i32_1 = arith.constant 0 : i32
    return %c0_i32, %c0_i32_0 : i32, i32
  }
  func.func @transform_3(%arg0: i32) -> (i32, i32) {
    %c0_i32 = arith.constant 0 : i32
    %c0_i32_0 = arith.constant 0 : i32
    %c0_i32_1 = arith.constant 0 : i32
    return %c0_i32, %c0_i32_0 : i32, i32
  }
  func.func @transform_4(%arg0: i32) -> (i32, i32) {
    %c0_i32 = arith.constant 0 : i32
    %c0_i32_0 = arith.constant 0 : i32
    %c0_i32_1 = arith.constant 0 : i32
    return %c0_i32, %c0_i32_0 : i32, i32
  }
  func.func @transform_5(%arg0: i32) -> (i32, i32) {
    %c0_i32 = arith.constant 0 : i32
    %c0_i32_0 = arith.constant 0 : i32
    %c0_i32_1 = arith.constant 0 : i32
    return %c0_i32, %c0_i32_0 : i32, i32
  }
  func.func @transform_6(%arg0: i32) -> (i32, i32) {
    %c0_i32 = arith.constant 0 : i32
    %c0_i32_0 = arith.constant 0 : i32
    %c0_i32_1 = arith.constant 0 : i32
    return %c0_i32, %c0_i32_0 : i32, i32
  }
  func.func @transform_7(%arg0: i32) -> (i32, i32) {
    %c0_i32 = arith.constant 0 : i32
    %c0_i32_0 = arith.constant 0 : i32
    %c0_i32_1 = arith.constant 0 : i32
    return %c0_i32, %c0_i32_0 : i32, i32
  }
  func.func @transform_8(%arg0: i32) -> (i32, i32) {
    %c0_i32 = arith.constant 0 : i32
    %c0_i32_0 = arith.constant 0 : i32
    %c0_i32_1 = arith.constant 0 : i32
    return %c0_i32, %c0_i32_0 : i32, i32
  }
  func.func @transform_9(%arg0: i32) -> (i32, i32) {
    %c0_i32 = arith.constant 0 : i32
    %c0_i32_0 = arith.constant 0 : i32
    %c0_i32_1 = arith.constant 0 : i32
    return %c0_i32, %c0_i32_0 : i32, i32
  }
  func.func @transform_10(%arg0: i32) -> (i32, i32) {
    %c0_i32 = arith.constant 0 : i32
    %c0_i32_0 = arith.constant 0 : i32
    %c0_i32_1 = arith.constant 0 : i32
    return %c0_i32, %c0_i32_0 : i32, i32
  }
  func.func @transform_11(%arg0: i32) -> (i32, i32) {
    %c0_i32 = arith.constant 0 : i32
    %c0_i32_0 = arith.constant 0 : i32
    %c0_i32_1 = arith.constant 0 : i32
    return %c0_i32, %c0_i32_0 : i32, i32
  }
  func.func @transform_12(%arg0: i32) -> (i32, i32) {
    %c0_i32 = arith.constant 0 : i32
    %c0_i32_0 = arith.constant 0 : i32
    return %arg0, %c0_i32 : i32, i32
  }
}

</mosaic_0001>

<bundles_post_ra>
// kernel: tpu_custom_call.1
= control target key start
LH: loop header
LB: loop body
LE: loop exit
PB: predicated region body
PF: predicated region fallthrough
CT: control target
= control target key end

     0   :  { %v702_v0 = vmov 0.0|0.0   ;;  %vm703_vm0 = vmmov 0   ;;  %v704_v3 = vmov 0.0   ;;  %vm52_vm1 = vcmask 130048   ;;  %s939_s2 = inlined_call_operand.vmem [shape: f32[16,64], index: 2, kind: input, shape index: {}]   ;;  %s940_s4 = inlined_call_operand.vmem [shape: f32[64,128], index: 4, kind: input, shape index: {}]   ;;  %s941_s0 = inlined_call_operand.vmem [shape: f32[8,16], index: 0, kind: input, shape index: {}]   ;;  %s942_s6 = inlined_call_operand.vmem [shape: f32[128,64], index: 6, kind: input, shape index: {}]   ;;  %s943_s3 = inlined_call_operand.vmem [shape: f32[1,64], index: 3, kind: input, shape index: {}]   ;;  %s944_s8 = inlined_call_operand.vmem [shape: f32[64,32], index: 8, kind: input, shape index: {}]   ;;  %s945_s5 = inlined_call_operand.vmem [shape: f32[1,128], index: 5, kind: input, shape index: {}]   ;;  %s946_s7 = inlined_call_operand.vmem [shape: f32[1,64], index: 7, kind: input, shape index: {}]   ;;  %s947_s10 = inlined_call_operand.vmem [shape: f32[32,4], index: 10, kind: input, shape index: {}]   ;;  %s948_s9 = inlined_call_operand.vmem [shape: f32[1,32], index: 9, kind: input, shape index: {}]   ;;  %s949_s11 = inlined_call_operand.vmem [shape: f32[1,4], index: 11, kind: input, shape index: {}]   ;;  %s950_s1 = inlined_call_operand.<no memory space> [shape: f32[1,1], index: 1, kind: input, shape index: {}]   ;;  %s951_s12 = inlined_call_operand.vmem [shape: f32[8,4], index: 12, kind: output, shape index: {}]  }
   0x1   :  { %639 = vmatprep.subr.bf16.mxu0 %v702_v0  ;;  %v43_v1 = vld [vmem:[%s939_s2] sm:$0xff]  ;;  %v44_v2 = vld [vmem:[%s939_s2 + $0x8] sm:$0xff]  ;;  %552 = vmatprep.mubr.msk.f32.mxu0 %vm703_vm0, %v704_v3  ;;  %v129_v7 = vld [vmem:[%s940_s4 + $0x10] sm:$0xff]  ;;  %vm142_vm2 = vcmask 523264   ;;  %vm411_vm3 = vcmask 261120   ;;  %vm490_vm4 = vcmask 31744  }
   0x2   :  { %v640_v4 = vpack.c.bf16 %v44_v2, %v43_v1  ;;  %642 = vmatprep.subr.bf16.mxu1 %v702_v0  ;;  %v127_v5 = vld [vmem:[%s940_s4] sm:$0xff]  ;;  %v128_v6 = vld [vmem:[%s940_s4 + $0x8] sm:$0xff]  ;;  %571 = vmatprep.mubr.msk.f32.mxu1 %vm703_vm0, %v704_v3  ;;  %v130_v9 = vld [vmem:[%s940_s4 + $0x18] sm:$0xff] }
   0x3   :  { %v643_v8 = vpack.c.bf16 %v128_v6, %v127_v5  ;;  %v42_v10 = vld [vmem:[%s941_s0] sm:$0xff]  ;;  %v646_v11 = vpack.c.bf16 %v130_v9, %v129_v7  ;;  %v132_v13 = vld [vmem:[%s940_s4 + $0x28] sm:$0xff]  ;;  %v133_v15 = vld [vmem:[%s940_s4 + $0x30] sm:$0xff] }
   0x4   :  { %641 = vmatpush3.bf16.msra.mxu0 %v640_v4  ;;  %v131_v12 = vld [vmem:[%s940_s4 + $0x20] sm:$0xff]  ;;  %v134_v16 = vld [vmem:[%s940_s4 + $0x38] sm:$0xff]  ;;  %v218_v19 = vld [vmem:[%s942_s6 + $0x8] sm:$0xff] }
   0x5   :  { %644 = vmatpush3.bf16.msra.mxu1 %v643_v8  ;;  %654 = vmatprep.subr.bf16.mxu0 %v702_v0  ;;  %v649_v14 = vpack.c.bf16 %v132_v13, %v131_v12  ;;  %v652_v17 = vpack.c.bf16 %v134_v16, %v133_v15  ;;  %v217_v18 = vld [vmem:[%s942_s6] sm:$0xff]  ;;  %v219_v20 = vld [vmem:[%s942_s6 + $0x10] sm:$0xff]  ;;  %v220_v22 = vld [vmem:[%s942_s6 + $0x18] sm:$0xff] }
   0x6   :  { %645 = vmatprep.subr.bf16.mxu1 %v702_v0  ;;  %v655_v21 = vpack.c.bf16 %v218_v19, %v217_v18  ;;  %v658_v23 = vpack.c.bf16 %v220_v22, %v219_v20  ;;  %v221_v24 = vld [vmem:[%s942_s6 + $0x20] sm:$0xff]  ;;  %v222_v25 = vld [vmem:[%s942_s6 + $0x28] sm:$0xff]  ;;  %v223_v27 = vld [vmem:[%s942_s6 + $0x30] sm:$0xff]  ;;  %v487_v20 = vstv %s950_s1 }
   0x7   :  { %553 = vmatmul.mubr.msk.f32.vlgmr.msra.gmra.mrb[0].mxu0 %vm52_vm1, %v42_v10  ;;  %v661_v26 = vpack.c.bf16 %v222_v25, %v221_v24  ;;  %v224_v28 = vld [vmem:[%s942_s6 + $0x38] sm:$0xff]  ;;  %v225_v30 = vld [vmem:[%s942_s6 + $0x40] sm:$0xff]  ;;  %v226_v31 = vld [vmem:[%s942_s6 + $0x48] sm:$0xff] }
   0x8   :  { %606 = vmatprep.mubr.msk.f32.mxu0 %vm703_vm0, %v704_v3  ;;  %656 = vmatpush3.bf16.msra.mxu0 %v655_v21  ;;  %v664_v29 = vpack.c.bf16 %v224_v28, %v223_v27  ;;  %v667_v32 = vpack.c.bf16 %v226_v31, %v225_v30  ;;  %v227_v33 = vld [vmem:[%s942_s6 + $0x50] sm:$0xff]  ;;  %v228_v34 = vld [vmem:[%s942_s6 + $0x58] sm:$0xff]  ;;  %v229_v36 = vld [vmem:[%s942_s6 + $0x60] sm:$0xff] }
   0x9   :  { %647 = vmatpush3.bf16.msra.mxu1 %v646_v11  ;;  %657 = vmatprep.subr.bf16.mxu0 %v702_v0  ;;  %v670_v35 = vpack.c.bf16 %v228_v34, %v227_v33  ;;  %v230_v37 = vld [vmem:[%s942_s6 + $0x68] sm:$0xff]  ;;  %v496_v39 = vld [vmem:[%s943_s3] ss:$0 sm:$0xff]  ;;  %v231_v44 = vld [vmem:[%s942_s6 + $0x70] sm:$0xff] }
   0xa   :  { %648 = vmatprep.subr.bf16.mxu1 %v702_v0  ;;  %v673_v38 = vpack.c.bf16 %v230_v37, %v229_v36  ;;  %v232_v45 = vld [vmem:[%s942_s6 + $0x78] sm:$0xff]  ;;  %v311_v47 = vld [vmem:[%s944_s8] sm:$0xff]  ;;  %v312_v48 = vld [vmem:[%s944_s8 + $0x8] sm:$0xff] }
   0xb   :  { %v676_v46 = vpack.c.bf16 %v232_v45, %v231_v44  ;;  %v313_v49 = vld [vmem:[%s944_s8 + $0x10] sm:$0xff]  ;;  %v679_v50 = vpack.c.bf16 %v312_v48, %v311_v47  ;;  %v314_v51 = vld [vmem:[%s944_s8 + $0x18] sm:$0xff]  ;;  %v315_v53 = vld [vmem:[%s944_s8 + $0x20] sm:$0xff] }
   0xc   :  { %659 = vmatpush3.bf16.msra.mxu0 %v658_v23  ;;  %v682_v52 = vpack.c.bf16 %v314_v51, %v313_v49  ;;  %v316_v54 = vld [vmem:[%s944_s8 + $0x28] sm:$0xff]  ;;  %v498_v56 = vld [vmem:[%s945_s5] ss:$0 sm:$0xff]  ;;  %v317_v61 = vld [vmem:[%s944_s8 + $0x30] sm:$0xff] }
   0xd   :  { %650 = vmatpush3.bf16.msra.mxu1 %v649_v14  ;;  %660 = vmatprep.subr.bf16.mxu0 %v702_v0  ;;  %v685_v55 = vpack.c.bf16 %v316_v54, %v315_v53  ;;  %v318_v62 = vld [vmem:[%s944_s8 + $0x38] sm:$0xff]  ;;  %v500_v1 = vld [vmem:[%s946_s7] ss:$0 sm:$0xff]  ;;  %v401_v4 = vld [vmem:[%s947_s10 + $0x8] sm:$0xff] }
   0xe   :  { %651 = vmatprep.subr.bf16.mxu1 %v702_v0  ;;  %v688_v63 = vpack.c.bf16 %v318_v62, %v317_v61  ;;  %v400_v2 = vld [vmem:[%s947_s10] sm:$0xff]  ;;  %v402_v10 = vld [vmem:[%s947_s10 + $0x10] sm:$0xff]  ;;  %v403_v11 = vld [vmem:[%s947_s10 + $0x18] sm:$0xff] }
   0xf   :  { %v691_v8 = vpack.c.bf16 %v401_v4, %v400_v2  ;;  %v694_v12 = vpack.c.bf16 %v403_v11, %v402_v10  ;;  %v501_v13 = vld [vmem:[%s948_s9] ss:$0 sm:$0xff] }
  0x10   :  { %662 = vmatpush3.bf16.msra.mxu0 %v661_v26 }
  0x11   :  { %653 = vmatpush3.bf16.msra.mxu1 %v652_v17  ;;  %663 = vmatprep.subr.bf16.mxu0 %v702_v0 }
  0x12   :  { %678 = vmatprep.subr.bf16.mxu1 %v702_v0 }
  0x14   :  { %665 = vmatpush3.bf16.msra.mxu0 %v664_v29 }
  0x15   :  { %666 = vmatprep.subr.bf16.mxu0 %v702_v0 }
  0x18   :  { %668 = vmatpush3.bf16.msra.mxu0 %v667_v32 }
  0x19   :  { %669 = vmatprep.subr.bf16.mxu0 %v702_v0 }
  0x1c   :  { %671 = vmatpush3.bf16.msra.mxu0 %v670_v35 }
  0x1d   :  { %672 = vmatprep.subr.bf16.mxu0 %v702_v0 }
  0x20   :  { %674 = vmatpush3.bf16.msra.mxu0 %v673_v38 }
  0x21   :  { %675 = vmatprep.subr.bf16.mxu0 %v702_v0 }
  0x24   :  { %677 = vmatpush3.bf16.msra.mxu0 %v676_v46 }
  0xda   :  { %v122_v40 = vpop.f32.mrb[0].mxu0 }
  0xdb   :  { %v123_v41 = vadd.f32 %v496_v39, %v122_v40  ;;  %v554_v42 = vpop.f32.mrb[1].mxu0 }
  0xdd   :  { %v126_v43 = vmax.f32 %v123_v41, 0.0 }
  0xdf   :  { %572 = vmatmul.mubr.msk.f32.vlgmr.msra.gmra.mrb[0].mxu1 %vm142_vm2, %v126_v43 }
  0xe0   :  { %625 = vmatprep.mubr.msk.f32.mxu1 %vm703_vm0, %v704_v3  ;;  %680 = vmatpush3.bf16.msra.mxu1 %v679_v50 }
  0xe1   :  { %681 = vmatprep.subr.bf16.mxu1 %v702_v0 }
  0xe4   :  { %683 = vmatpush3.bf16.msra.mxu1 %v682_v52 }
  0xe5   :  { %684 = vmatprep.subr.bf16.mxu1 %v702_v0 }
  0xe8   :  { %686 = vmatpush3.bf16.msra.mxu1 %v685_v55 }
  0xe9   :  { %687 = vmatprep.subr.bf16.mxu1 %v702_v0 }
  0xec   :  { %689 = vmatpush3.bf16.msra.mxu1 %v688_v63 }
  0xed   :  { %690 = vmatprep.subr.bf16.mxu1 %v702_v0 }
 0x1b2   :  { %v212_v57 = vpop.f32.mrb[0].mxu1 }
 0x1b3   :  { %v213_v58 = vadd.f32 %v498_v56, %v212_v57  ;;  %v573_v59 = vpop.f32.mrb[1].mxu1 }
 0x1b5   :  { %v216_v60 = vmax.f32 %v213_v58, 0.0 }
 0x1b7   :  { %607 = vmatmul.mubr.f32.vlgmr.msra.gmra.mrb[2].mxu0 %v216_v60 }
 0x28a   :  { %v306_v5 = vpop.f32.mrb[2].mxu0 }
 0x28b   :  { %v307_v6 = vadd.f32 %v500_v1, %v306_v5  ;;  %v608_v7 = vpop.f32.mrb[3].mxu0 }
 0x28d   :  { %v310_v9 = vmax.f32 %v307_v6, 0.0 }
 0x28f   :  { %626 = vmatmul.mubr.msk.f32.vlgmr.msra.gmra.mrb[2].mxu1 %vm142_vm2, %v310_v9 }
 0x290   :  { %692 = vmatpush3.bf16.msra.mxu1 %v691_v8  ;;  %636 = vmatprep.mubr.msk.f32.mxu1 %vm703_vm0, %v704_v3 }
 0x291   :  { %693 = vmatprep.subr.bf16.mxu1 %v702_v0  ;;  %v503_v0 = vld [vmem:[%s949_s11] ss:$0 sm:$0xff] }
 0x294   :  { %695 = vmatpush3.bf16.msra.mxu1 %v694_v12 }
 0x362   :  { %v395_v14 = vpop.f32.mrb[2].mxu1 }
 0x363   :  { %v396_v15 = vadd.f32 %v501_v13, %v395_v14  ;;  %v627_v16 = vpop.f32.mrb[3].mxu1 }
 0x365   :  { %v399_v3 = vmax.f32 %v396_v15, 0.0 }
 0x367   :  { %637 = vmatmul.mubr.msk.f32.vlgmr.msra.gmra.mrb[4].mxu1 %vm411_vm3, %v399_v3 }
 0x43a   :  { %v481_v17 = vpop.f32.mrb[4].mxu1 }
 0x43b   :  { %v482_v18 = vadd.f32 %v503_v0, %v481_v17  ;;  %v638_v19 = vpop.f32.mrb[5].mxu1 }
 0x43d   :  { %700 = vtanh.f32 %v482_v18 }
 0x447   :  { %v701_v21 = vpop.eup %700 }
 0x448   :  { %v488_v22 = vmul.f32 %v701_v21, %v487_v20 }
 0x44a   :  { %v696_v23 = vround.rtne.f32 %v488_v22 }
 0x44c   :  { %491 = vst.msk [vmem:[%s951_s12] sm:$0xff] %vm490_vm4, %v696_v23 }

</bundles_post_ra>
